<compile_context>
chip_gen: v7x
topology: tpu7x:2x2x1
jax: 0.10.0
libtpu: 0.0.40
codegen_flags: <defaults>
</compile_context>

<pallas_src>
import jax
import jax.numpy as jnp
from jax.experimental import pallas as pl
from jax.experimental.pallas import tpu as pltpu


# --------------------------------------------------------------------------- #
# Kernel
# --------------------------------------------------------------------------- #
def _simple_nn_kernel(x_ref, w1_ref, b1_ref, w2_ref, b2_ref, o_ref):
    """One batch tile: o = relu(x @ W1 + b1) @ W2 + b2 (f32 accumulation)."""
    cdt = w1_ref.dtype                        # matmul operand dtype (f32 / bf16)
    x = x_ref[...].astype(cdt)
    h = jnp.dot(x, w1_ref[...], preferred_element_type=jnp.float32)
    h = jnp.maximum(h + b1_ref[...], 0.0)     # bias + ReLU in f32 on the VPU
    y = jnp.dot(h.astype(cdt), w2_ref[...], preferred_element_type=jnp.float32)
    o_ref[...] = (y + b2_ref[...]).astype(o_ref.dtype)


# --------------------------------------------------------------------------- #
# One-time parameter preparation (pad / cast / reshape -- NOT per forward call)
# --------------------------------------------------------------------------- #
def prepare_simple_nn_params(w1, b1, w2, b2, *, param_dtype=None):
    """Pad hidden dim to 128 lanes, optionally pad output dim, cast weights.

    w1: (in_features, hidden)   b1: (hidden,)
    w2: (hidden, out_features)  b2: (out_features,)
    Weights are stored as (in, out), i.e. the transpose of PyTorch nn.Linear.
    """
    in_f, hid = w1.shape
    out_f = w2.shape[1]

    wdt = w1.dtype if param_dtype is None else jnp.dtype(param_dtype)

    hid_pad = pl.cdiv(hid, 128) * 128
    out_128 = pl.cdiv(out_f, 128) * 128
    # Lane-dense output only when padding overhead is <= 2x; for tiny out_f a
    # masked store beats a 16x-padded writeback + wrapper slice.
    out_pad = out_128 if (out_f % 128 == 0 or 2 * out_f >= out_128) else out_f

    w1p = jnp.zeros((in_f, hid_pad), wdt).at[:, :hid].set(w1.astype(wdt))
    b1p = jnp.zeros((1, hid_pad), jnp.float32).at[0, :hid].set(
        b1.astype(jnp.float32))
    w2p = jnp.zeros((hid_pad, out_pad), wdt).at[:hid, :out_f].set(w2.astype(wdt))
    b2p = jnp.zeros((1, out_pad), jnp.float32).at[0, :out_f].set(
        b2.astype(jnp.float32))

    return {"w1": w1p, "b1": b1p, "w2": w2p, "b2": b2p, "out_features": out_f}


# --------------------------------------------------------------------------- #
# Forward wrapper
# --------------------------------------------------------------------------- #
def _vmem_capacity_bytes():
    try:
        return int(pltpu.get_tpu_info().vmem_capacity_bytes)
    except Exception:
        return 64 << 20      # conservative: v7x per-TensorCore physical VMEM


def _resident_spec(shape):
    """Constant-index (VMEM-resident) BlockSpec, single-buffered if supported."""
    idx = lambda i: (0,) * len(shape)
    buffered = getattr(pl, "Buffered", None)
    if buffered is not None:
        try:
            return pl.BlockSpec(shape, idx, pipeline_mode=buffered(1))
        except TypeError:
            pass
    return pl.BlockSpec(shape, idx)


def simple_nn_forward(x, params, *, tb=512):
    """Fused SimpleNN forward.  x: (B, in_features); params from prepare_*()."""
    w1p, b1p, w2p, b2p = params["w1"], params["b1"], params["w2"], params["b2"]
    out_f = params["out_features"]

    B, in_f = x.shape
    assert w1p.shape[0] == in_f, "x feature dim does not match prepared W1"
    hid_pad = w1p.shape[1]
    out_pad = w2p.shape[1]

    # ---- batch tiling: pad x at most once, keep >=2 grid steps when possible
    tb = max(8, (int(tb) // 8) * 8)
    b8 = pl.cdiv(B, 8) * 8                       # minimal sublane-aligned batch
    if tb >= b8:
        if b8 >= 16:
            # split into two tiles so the parallel axis feeds both v7x cores
            tb = ((b8 // 2 + 7) // 8) * 8
            b_pad = 2 * tb
        else:
            tb = b8
            b_pad = b8
    else:
        b_pad = pl.cdiv(B, tb) * tb
    if b_pad != B:
        x = jnp.zeros((b_pad, in_f), x.dtype).at[:B].set(x)

    grid = (b_pad // tb,)

    # ---- exact VMEM budget: resident weights (1 buf) + double-buffered x/out
    w_item = jnp.dtype(w1p.dtype).itemsize
    x_item = jnp.dtype(x.dtype).itemsize
    weight_bytes = (in_f * hid_pad + hid_pad * out_pad) * w_item
    bias_bytes = (hid_pad + out_pad) * 4
    xin_bytes = 2 * tb * in_f * x_item
    yout_bytes = 2 * tb * out_pad * 4
    act_bytes = tb * (in_f + hid_pad + 2 * out_pad) * 4
    needed = weight_bytes + bias_bytes + xin_bytes + yout_bytes + act_bytes
    cap = max(_vmem_capacity_bytes() - (8 << 20), 16 << 20)
    vmem_limit = int(min(max(needed + (4 << 20), 16 << 20), cap))

    flops = 2 * b_pad * (in_f * hid_pad + hid_pad * out_pad)
    bytes_accessed = (b_pad * in_f * x_item + weight_bytes + bias_bytes
                      + b_pad * out_pad * 4)

    out = pl.pallas_call(
        _simple_nn_kernel,
        out_shape=jax.ShapeDtypeStruct((b_pad, out_pad), jnp.float32),
        grid_spec=pltpu.PrefetchScalarGridSpec(
            num_scalar_prefetch=0,
            grid=grid,
            in_specs=[
                pl.BlockSpec((tb, in_f), lambda i: (i, 0)),   # x tile (streamed)
                _resident_spec((in_f, hid_pad)),              # W1 (resident)
                _resident_spec((1, hid_pad)),                 # b1 (resident)
                _resident_spec((hid_pad, out_pad)),           # W2 (resident)
                _resident_spec((1, out_pad)),                 # b2 (resident)
            ],
            out_specs=pl.BlockSpec((tb, out_pad), lambda i: (i, 0)),
        ),
        compiler_params=pltpu.CompilerParams(
            dimension_semantics=("parallel",),
            vmem_limit_bytes=vmem_limit,
        ),
        cost_estimate=pl.CostEstimate(
            flops=flops, transcendentals=0, bytes_accessed=bytes_accessed),
    )(x, w1p, b1p, w2p, b2p)

    if b_pad != B or out_pad != out_f:
        out = out[:B, :out_f]
    return out


# --------------------------------------------------------------------------- #
# Reference + init
# --------------------------------------------------------------------------- #
def _reference(x, w1, b1, w2, b2):
    return jnp.maximum(x @ w1 + b1, 0.0) @ w2 + b2


def init_params(key, in_f, hid, out_f):
    """nn.Linear-style init: U(-1/sqrt(fan_in), +1/sqrt(fan_in))."""
    k1, k2, k3, k4 = jax.random.split(key, 4)
    bd1 = 1.0 / (in_f ** 0.5)
    bd2 = 1.0 / (hid ** 0.5)
    # stored as (in, out) == transpose of PyTorch's (out, in) weight
    w1 = jax.random.uniform(k1, (in_f, hid), jnp.float32, -bd1, bd1)
    b1 = jax.random.uniform(k2, (hid,), jnp.float32, -bd1, bd1)
    w2 = jax.random.uniform(k3, (hid, out_f), jnp.float32, -bd2, bd2)
    b2 = jax.random.uniform(k4, (out_f,), jnp.float32, -bd2, bd2)
    return w1, b1, w2, b2


if __name__ == "__main__":
    key = jax.random.PRNGKey(0)
    kparam, kx = jax.random.split(key)

    B, IN, HID, OUT = 8, 32, 32, 8
    w1, b1, w2, b2 = init_params(kparam, IN, HID, OUT)
    x = jax.random.normal(kx, (B, IN), jnp.float32)

    ref = _reference(x, w1, b1, w2, b2)

    # f32 parameters: matches the pure-JAX reference tightly.
    params_f32 = prepare_simple_nn_params(w1, b1, w2, b2)
    out = jax.block_until_ready(simple_nn_forward(x, params_f32))
    assert out.shape == (B, OUT)
    assert jnp.allclose(out, ref, atol=1e-4, rtol=1e-4), (
        f"max abs err {jnp.max(jnp.abs(out - ref))}")

    # bf16 parameters (bandwidth-optimized path), f32 MXU accumulation.
    # (h is re-quantized to bf16 before the second matmul -- fine for
    #  inference, reflected in the looser tolerance.)
    params_bf16 = prepare_simple_nn_params(w1, b1, w2, b2,
                                           param_dtype=jnp.bfloat16)
    out_bf16 = jax.block_until_ready(simple_nn_forward(x, params_bf16))
    assert out_bf16.shape == (B, OUT)
    assert jnp.allclose(out_bf16, ref, atol=5e-2, rtol=5e-2), (
        f"max abs err {jnp.max(jnp.abs(out_bf16 - ref))}")

    print("KERNEL_OK")
</pallas_src>

<mosaic_0001>
module attributes {stable_mosaic.version = 11 : i64} {
  func.func @_simple_nn_kernel(%arg0: i32, %arg1: memref<8x32xf32, #tpu.memory_space<vmem>>, %arg2: memref<32x128xf32, #tpu.memory_space<vmem>>, %arg3: memref<1x128xf32, #tpu.memory_space<vmem>>, %arg4: memref<128x8xf32, #tpu.memory_space<vmem>>, %arg5: memref<1x8xf32, #tpu.memory_space<vmem>>, %arg6: memref<8x8xf32, #tpu.memory_space<vmem>>) attributes {dimension_semantics = [#tpu.dimension_semantics<parallel>], iteration_bounds = array<i64: 1>, scalar_prefetch = 0 : i64, scratch_operands = 0 : i64, tpu.core_type = #tpu.core_type<tc>, window_params = [{transform_indices = @transform_0, window_bounds = array<i64: 8, 32>}, {pipeline_mode = #tpu.pipeline_mode<synchronous>, transform_indices = @transform_1, window_bounds = array<i64: 32, 128>}, {pipeline_mode = #tpu.pipeline_mode<synchronous>, transform_indices = @transform_2, window_bounds = array<i64: 1, 128>}, {pipeline_mode = #tpu.pipeline_mode<synchronous>, transform_indices = @transform_3, window_bounds = array<i64: 128, 8>}, {pipeline_mode = #tpu.pipeline_mode<synchronous>, transform_indices = @transform_4, window_bounds = array<i64: 1, 8>}, {transform_indices = @transform_5, window_bounds = array<i64: 8, 8>}]} {
    %c0 = arith.constant 0 : index
    %c0_0 = arith.constant 0 : index
    %0 = vector.load %arg1[%c0, %c0_0] : memref<8x32xf32, #tpu.memory_space<vmem>>, vector<8x32xf32>
    %c0_1 = arith.constant 0 : index
    %c0_2 = arith.constant 0 : index
    %1 = vector.load %arg2[%c0_1, %c0_2] : memref<32x128xf32, #tpu.memory_space<vmem>>, vector<32x128xf32>
    %cst = arith.constant dense<0.000000e+00> : vector<8x128xf32>
    %2 = tpu.matmul %0, %1, %cst {dimension_numbers = #tpu.dot_dimension_numbers<[1], [0], [0], [1], [0, 0, 1, 1], [], []>} : vector<8x32xf32>, vector<32x128xf32>, vector<8x128xf32> -> vector<8x128xf32>
    %c0_3 = arith.constant 0 : index
    %c0_4 = arith.constant 0 : index
    %3 = vector.load %arg3[%c0_3, %c0_4] : memref<1x128xf32, #tpu.memory_space<vmem>>, vector<1x128xf32>
    %4 = vector.broadcast %3 : vector<1x128xf32> to vector<8x128xf32>
    %5 = arith.addf %2, %4 : vector<8x128xf32>
    %cst_5 = arith.constant 0.000000e+00 : f32
    %6 = vector.broadcast %cst_5 : f32 to vector<8x128xf32>
    %7 = arith.maximumf %5, %6 : vector<8x128xf32>
    %c0_6 = arith.constant 0 : index
    %c0_7 = arith.constant 0 : index
    %8 = vector.load %arg4[%c0_6, %c0_7] : memref<128x8xf32, #tpu.memory_space<vmem>>, vector<128x8xf32>
    %cst_8 = arith.constant dense<0.000000e+00> : vector<8x8xf32>
    %9 = tpu.matmul %7, %8, %cst_8 {dimension_numbers = #tpu.dot_dimension_numbers<[1], [0], [0], [1], [0, 0, 1, 1], [], []>} : vector<8x128xf32>, vector<128x8xf32>, vector<8x8xf32> -> vector<8x8xf32>
    %c0_9 = arith.constant 0 : index
    %c0_10 = arith.constant 0 : index
    %10 = vector.load %arg5[%c0_9, %c0_10] : memref<1x8xf32, #tpu.memory_space<vmem>>, vector<1x8xf32>
    %11 = vector.broadcast %10 : vector<1x8xf32> to vector<8x8xf32>
    %12 = arith.addf %9, %11 : vector<8x8xf32>
    %c0_11 = arith.constant 0 : index
    %c0_12 = arith.constant 0 : index
    %13 = vector.load %arg6[%c0_11, %c0_12] : memref<8x8xf32, #tpu.memory_space<vmem>>, vector<8x8xf32>
    tpu.vector_store %arg6[%c0_11, %c0_12], %12 {strides = array<i32>} : memref<8x8xf32, #tpu.memory_space<vmem>>, vector<8x8xf32>,
    return
  }
  func.func @transform_0(%arg0: i32) -> (i32, i32) {
    %c0_i32 = arith.constant 0 : i32
    %c0_i32_0 = arith.constant 0 : i32
    return %arg0, %c0_i32 : i32, i32
  }
  func.func @transform_1(%arg0: i32) -> (i32, i32) {
    %c0_i32 = arith.constant 0 : i32
    %c0_i32_0 = arith.constant 0 : i32
    %c0_i32_1 = arith.constant 0 : i32
    return %c0_i32, %c0_i32_0 : i32, i32
  }
  func.func @transform_2(%arg0: i32) -> (i32, i32) {
    %c0_i32 = arith.constant 0 : i32
    %c0_i32_0 = arith.constant 0 : i32
    %c0_i32_1 = arith.constant 0 : i32
    return %c0_i32, %c0_i32_0 : i32, i32
  }
  func.func @transform_3(%arg0: i32) -> (i32, i32) {
    %c0_i32 = arith.constant 0 : i32
    %c0_i32_0 = arith.constant 0 : i32
    %c0_i32_1 = arith.constant 0 : i32
    return %c0_i32, %c0_i32_0 : i32, i32
  }
  func.func @transform_4(%arg0: i32) -> (i32, i32) {
    %c0_i32 = arith.constant 0 : i32
    %c0_i32_0 = arith.constant 0 : i32
    %c0_i32_1 = arith.constant 0 : i32
    return %c0_i32, %c0_i32_0 : i32, i32
  }
  func.func @transform_5(%arg0: i32) -> (i32, i32) {
    %c0_i32 = arith.constant 0 : i32
    %c0_i32_0 = arith.constant 0 : i32
    return %arg0, %c0_i32 : i32, i32
  }
}

</mosaic_0001>

<bundles_post_ra>
// kernel: tpu_custom_call.1
= control target key start
LH: loop header
LB: loop body
LE: loop exit
PB: predicated region body
PF: predicated region fallthrough
CT: control target
= control target key end

     0   :  { %v346_v3 = vmov 0.0|0.0   ;;  %vm347_vm0 = vmmov 0   ;;  %v348_v6 = vmov 0.0   ;;  %s461_s0 = inlined_call_operand.vmem [shape: f32[8,32], index: 0, kind: input, shape index: {}]   ;;  %s462_s1 = inlined_call_operand.vmem [shape: f32[32,128], index: 1, kind: input, shape index: {}]   ;;  %s463_s2 = inlined_call_operand.vmem [shape: f32[1,128], index: 2, kind: input, shape index: {}]   ;;  %s464_s3 = inlined_call_operand.vmem [shape: f32[128,8], index: 3, kind: input, shape index: {}]   ;;  %s465_s4 = inlined_call_operand.vmem [shape: f32[1,8], index: 4, kind: input, shape index: {}]   ;;  %s466_s5 = inlined_call_operand.hbm [shape: f32[8,8], index: 5, kind: output, shape index: {}]  }
   0x1   :  { %v22_v0 = vld [vmem:[%s462_s1] sm:$0xff]  ;;  %v23_v1 = vld [vmem:[%s462_s1 + $0x8] sm:$0xff]  ;;  %v24_v2 = vld [vmem:[%s462_s1 + $0x10] sm:$0xff]  ;;  %288 = vmatprep.subr.bf16.mxu0 %v346_v3  ;;  %250 = vmatprep.mubr.msk.f32.mxu0 %vm347_vm0, %v348_v6 }
   0x2   :  { %v289_v4 = vpack.c.bf16 %v23_v1, %v22_v0  ;;  %v25_v5 = vld [vmem:[%s462_s1 + $0x18] sm:$0xff]  ;;  %v108_v7 = vld [vmem:[%s464_s3] sm:$0xff]  ;;  %294 = vmatprep.subr.bf16.mxu1 %v346_v3  ;;  %v109_v8 = vld [vmem:[%s464_s3 + $0x8] sm:$0xff]  ;;  %285 = vmatprep.mubr.msk.f32.mxu1 %vm347_vm0, %v348_v6 }
   0x3   :  { %v110_v9 = vld [vmem:[%s464_s3 + $0x10] sm:$0xff]  ;;  %v111_v10 = vld [vmem:[%s464_s3 + $0x18] sm:$0xff]  ;;  %v292_v11 = vpack.c.bf16 %v25_v5, %v24_v2  ;;  %v295_v12 = vpack.c.bf16 %v109_v8, %v108_v7  ;;  %v112_v14 = vld [vmem:[%s464_s3 + $0x20] sm:$0xff] }
   0x4   :  { %290 = vmatpush3.bf16.msra.mxu0 %v289_v4  ;;  %v298_v13 = vpack.c.bf16 %v111_v10, %v110_v9  ;;  %v113_v15 = vld [vmem:[%s464_s3 + $0x28] sm:$0xff] }
   0x5   :  { %291 = vmatprep.subr.bf16.mxu0 %v346_v3  ;;  %296 = vmatpush3.bf16.msra.mxu1 %v295_v12 }
   0x6   :  { %297 = vmatprep.subr.bf16.mxu1 %v346_v3 }
   0x7   :  { %10 = vsyncpa [#allocation3], 0  ;;  %v21_v16 = vld [vmem:[%s461_s0] sm:$0xff]  ;;  %vm33_vm1 = vcmask 261120   ;;  %v301_v17 = vpack.c.bf16 %v113_v15, %v112_v14  ;;  %v114_v18 = vld [vmem:[%s464_s3 + $0x30] sm:$0xff]  ;;  %s349_s11 = smov [#allocation2]  }
   0x8   :  { %293 = vmatpush3.bf16.msra.mxu0 %v292_v11  ;;  %v115_v19 = vld [vmem:[%s464_s3 + $0x38] sm:$0xff]  ;;  %v116_v21 = vld [vmem:[%s464_s3 + $0x40] sm:$0xff]  ;;  %v117_v22 = vld [vmem:[%s464_s3 + $0x48] sm:$0xff]  ;;  %s209_s12 = sshll.u32 %s349_s11, 4  ;;  %vm201_vm2 = vcmask 64512   ;;  %s210_s12 = int_to_ptr.vmem [resolvable:$true] %s209_s12 }
   0x9   :  { %299 = vmatpush3.bf16.msra.mxu1 %v298_v13  ;;  %v304_v20 = vpack.c.bf16 %v115_v19, %v114_v18  ;;  %v307_v23 = vpack.c.bf16 %v117_v22, %v116_v21  ;;  %v118_v24 = vld [vmem:[%s464_s3 + $0x50] sm:$0xff]  ;;  %v119_v25 = vld [vmem:[%s464_s3 + $0x58] sm:$0xff]  ;;  %v120_v27 = vld [vmem:[%s464_s3 + $0x60] sm:$0xff]  ;;  %p327_p1 = scmp.lt.s32.totalorder %s210_s12, %s210_s12 }
   0xa   :  { %300 = vmatprep.subr.bf16.mxu1 %v346_v3  ;;  %v310_v26 = vpack.c.bf16 %v119_v25, %v118_v24  ;;  %v121_v28 = vld [vmem:[%s464_s3 + $0x68] sm:$0xff]  ;;  %v122_v30 = vld [vmem:[%s464_s3 + $0x70] sm:$0xff]  ;;  %v123_v31 = vld [vmem:[%s464_s3 + $0x78] sm:$0xff]  ;;  %s322_s3 = scalar_lea.vmem %s210_s12, 128 }
   0xb   :  { %251 = vmatmul.mubr.msk.f32.vlgmr.msra.gmra.mrb[0].mxu0 %vm33_vm1, %v21_v16  ;;  %v313_v29 = vpack.c.bf16 %v121_v28, %v120_v27  ;;  %v316_v32 = vpack.c.bf16 %v123_v31, %v122_v30  ;;  %v217_v33 = vld [vmem:[%s463_s2] ss:$0 sm:$0xff]  ;;  %p323_p0 = scmp.ne.s32.totalorder %s210_s12, %s322_s3  ;;  %p328_p2 = scmp.lt.s32.totalorder %s322_s3, %s322_s3 }
   0xc   :  { %v219_v38 = vld [vmem:[%s465_s4] ss:$0 sm:$0xff] }
   0xd   :  { %302 = vmatpush3.bf16.msra.mxu1 %v301_v17  ;;  %p329_p3 = por %p328_p2, %p327_p1 }
   0xe   :  { %303 = vmatprep.subr.bf16.mxu1 %v346_v3 }
   0xf   :  { %p330_p4 = pnand %p329_p3, %p323_p0 }
  0x11   :  { %305 = vmatpush3.bf16.msra.mxu1 %v304_v20 }
  0x12   :  { %306 = vmatprep.subr.bf16.mxu1 %v346_v3 }
  0x15   :  { %308 = vmatpush3.bf16.msra.mxu1 %v307_v23 }
  0x16   :  { %309 = vmatprep.subr.bf16.mxu1 %v346_v3 }
  0x19   :  { %311 = vmatpush3.bf16.msra.mxu1 %v310_v26 }
  0x1a   :  { %312 = vmatprep.subr.bf16.mxu1 %v346_v3 }
  0x1d   :  { %314 = vmatpush3.bf16.msra.mxu1 %v313_v29 }
  0x1e   :  { %315 = vmatprep.subr.bf16.mxu1 %v346_v3 }
  0x21   :  { %317 = vmatpush3.bf16.msra.mxu1 %v316_v32 }
  0xde   :  { %v103_v34 = vpop.f32.mrb[0].mxu0 }
  0xdf   :  { %v104_v35 = vadd.f32 %v217_v33, %v103_v34  ;;  %v252_v36 = vpop.f32.mrb[1].mxu0 }
  0xe1   :  { %v107_v37 = vmax.f32 %v104_v35, 0.0 }
  0xe3   :  { %286 = vmatmul.mubr.f32.vlgmr.msra.gmra.mrb[0].mxu1 %v107_v37 }
 0x1b6   :  { %v197_v39 = vpop.f32.mrb[0].mxu1 }
 0x1b7   :  { %v198_v40 = vadd.f32 %v219_v38, %v197_v39  ;;  %v287_v41 = vpop.f32.mrb[1].mxu1 }
 0x1b9   :  { %202 = vst.msk [vmem:[#allocation2] sm:$0xff] %vm201_vm2, %v198_v40 }
 0x1ba   :  { %333 = shalt.err (!%p330_p4)
}
 0x1bb   :  { %s334_s14 = scalar_lea.hbm %s466_s5, 128 }
 0x1bc   :  { %p335_p5 = scmp.ne.s32.totalorder %s466_s5, %s334_s14  ;;  %p338_p6 = scmp.lt.u32.totalorder %s334_s14, %s466_s5 }
 0x1be   :  { %p340_p7 = pnand %p338_p6, %p335_p5 }
 0x1c0   :  { %343 = shalt.err (!%p340_p7)
}
 0x1c1   :  { %212 = dma.vmem_to_hbm [thread:$0]  %s210_s12, 128, %s466_s5, [#allocation3]  }
 0x1c2   :  { %344 = dma.done.wait [#allocation3], 128  }
 0x1c3   :  { %345 = vsyncadd [#allocation3], 4294967168 }
 0x1c4   :  { %216 = vsyncpa [#allocation3], 1 }

</bundles_post_ra>
